<compile_context>
chip_gen: v7x
topology: tpu7x:2x2x1
jax: 0.10.0
libtpu: 0.0.40
codegen_flags: <defaults>
</compile_context>

<pallas_src>
import jax
import jax.numpy as jnp
from jax.experimental import pallas as pl
from jax.experimental.pallas import tpu as pltpu


def _normalize_kernel(x_ref, sb_ref, o_ref):
    # out = x * scale + bias, scale = 1/sd, bias = -mean/sd.
    # sb_ref is a (tile_r, 2) f32 block: col 0 = scale, col 1 = bias.
    # Compute in f32, cast once on store.  Pure VPU + load/store work.
    x = x_ref[...].astype(jnp.float32)
    scale = sb_ref[:, 0:1]
    bias = sb_ref[:, 1:2]
    o_ref[...] = (x * scale + bias).astype(o_ref.dtype)


def _round_up(x, m):
    return ((x + m - 1) // m) * m


def _sublane_pack(dtype):
    """Rows per packed sublane group: f32 -> 8, bf16 -> 16, int8/fp8 -> 32."""
    itemsize = jnp.dtype(dtype).itemsize
    return max(8, 32 // max(1, itemsize))


def _vmem_capacity_bytes():
    """Physical VMEM per core; conservative 64 MiB fallback (v7x) if unknown."""
    try:
        return int(pltpu.get_tpu_info().vmem_capacity_bytes)
    except Exception:
        return 64 * 1024 * 1024


def normalize_layer(x, means, sds, *, target_block_bytes=2 * 1024 * 1024):
    """Pallas implementation of NormalizeLayer.forward for NCHW input."""
    N, C, H, W = x.shape
    R = N * C          # rows: (batch, channel)
    S = H * W          # cols: spatial (lane-dense last dim)

    in_dtype = x.dtype
    # PyTorch promotes integer inputs to float via (input - means) / sds.
    out_dtype = in_dtype if jnp.issubdtype(in_dtype, jnp.floating) else jnp.float32
    in_isz = jnp.dtype(in_dtype).itemsize
    out_isz = jnp.dtype(out_dtype).itemsize
    itemsize = max(in_isz, out_isz)          # conservative for budgeting

    x2 = x.reshape(R, S)

    # Fused per-row scale/bias columns in f32 (row n*C + c == channel c of
    # batch n, matching jnp.tile over N):  out = x * scale + bias.
    scale = 1.0 / sds.astype(jnp.float32)
    bias = -means.astype(jnp.float32) * scale
    sb = jnp.stack([jnp.tile(scale, (N,)), jnp.tile(bias, (N,))], axis=-1)  # (R, 2)

    sub = _sublane_pack(in_dtype)

    # ---- tile selection: lane-dense near-budget blocks, cdiv (ragged) grid --
    rows_budget = max(sub, target_block_bytes // max(1, S * itemsize))
    if R <= rows_budget:
        tile_r = R                                    # full extent: always legal
    else:
        tile_r = (rows_budget // sub) * sub           # sublane-aligned, near budget
    # Megacore: keep >= 2 row blocks on the leading "parallel" axis so both
    # v7x TensorCores get work (negligible cost on 1-TC v5e/v6e).
    if R >= 2 * sub:
        tile_r = min(tile_r, _round_up(-(-R // 2), sub))

    tile_c = S
    # Only split columns if even a minimal-height full-width block is well
    # over budget (huge spatial extent); keep 128-lane alignment.
    if tile_r * S * itemsize > 2 * target_block_bytes and S > 128:
        cols_budget = max(128, target_block_bytes // max(1, tile_r * itemsize))
        tile_c = (cols_budget // 128) * 128

    grid_r = pl.cdiv(R, tile_r)
    grid_c = pl.cdiv(S, tile_c)

    # ---- VMEM budget --------------------------------------------------------
    # Double-buffered input + output tiles plus the lane-padded (tile_r, 2)
    # scale/bias block (pads to (ceil(tile_r/8)*8, 128) f32 words).
    in_tile_bytes = tile_r * tile_c * in_isz
    out_tile_bytes = tile_r * tile_c * out_isz
    sb_tile_bytes = _round_up(tile_r, 8) * 128 * 4
    working = 2 * (in_tile_bytes + out_tile_bytes + sb_tile_bytes)
    vmem_cap = _vmem_capacity_bytes()
    vmem_limit = int(min(max(32 * 1024 * 1024, working * 5 // 4),
                         (vmem_cap * 3) // 4))

    # ---- grid / specs -------------------------------------------------------
    if grid_c == 1:
        grid = (grid_r,)
        x_spec = pl.BlockSpec((tile_r, tile_c), lambda i: (i, 0))
        sb_spec = pl.BlockSpec((tile_r, 2), lambda i: (i, 0))
        out_spec = pl.BlockSpec((tile_r, tile_c), lambda i: (i, 0))
        dim_sem = ("parallel",)
    else:
        grid = (grid_r, grid_c)
        x_spec = pl.BlockSpec((tile_r, tile_c), lambda i, j: (i, j))
        sb_spec = pl.BlockSpec((tile_r, 2), lambda i, j: (i, 0))
        out_spec = pl.BlockSpec((tile_r, tile_c), lambda i, j: (i, j))
        dim_sem = ("parallel", "parallel")

    cost = pl.CostEstimate(
        flops=2 * R * S,
        transcendentals=0,
        bytes_accessed=R * S * (in_isz + out_isz) + R * 8,
    )

    out2 = pl.pallas_call(
        _normalize_kernel,
        out_shape=jax.ShapeDtypeStruct((R, S), out_dtype),
        grid_spec=pltpu.PrefetchScalarGridSpec(
            num_scalar_prefetch=0,
            grid=grid,
            in_specs=[x_spec, sb_spec],
            out_specs=out_spec,
        ),
        compiler_params=pltpu.CompilerParams(
            dimension_semantics=dim_sem,
            vmem_limit_bytes=vmem_limit,
        ),
        cost_estimate=cost,
    )(x2, sb)

    return out2.reshape(N, C, H, W)


if __name__ == "__main__":
    key = jax.random.PRNGKey(0)

    # Small NCHW input: batch=2, channels=4, spatial=16x16.
    N, C, H, W = 2, 4, 16, 16
    x = jax.random.normal(key, (N, C, H, W), dtype=jnp.float32)

    # Deterministic "dataset" per-channel means / stds (what __init__ holds).
    means = jnp.array([0.485, 0.456, 0.406, 0.45], dtype=jnp.float32)
    sds = jnp.array([0.229, 0.224, 0.225, 0.25], dtype=jnp.float32)

    out = normalize_layer(x, means, sds)
    out = jax.block_until_ready(out)

    # Reference: exact semantics of the PyTorch forward (per-channel broadcast).
    ref = (x - means[None, :, None, None]) / sds[None, :, None, None]
    assert out.shape == x.shape and out.dtype == x.dtype
    # Kernel uses fused scale/bias (x*(1/sd) - mean/sd): a couple ulps vs. the
    # subtract-then-divide reference.
    assert jnp.allclose(out, ref, rtol=1e-5, atol=1e-5)

    print("KERNEL_OK")
</pallas_src>

<mosaic_0001>
module attributes {stable_mosaic.version = 11 : i64} {
  func.func @_normalize_kernel(%arg0: i32, %arg1: memref<8x256xf32, #tpu.memory_space<vmem>>, %arg2: memref<8x2xf32, #tpu.memory_space<vmem>>, %arg3: memref<8x256xf32, #tpu.memory_space<vmem>>) attributes {dimension_semantics = [#tpu.dimension_semantics<parallel>], iteration_bounds = array<i64: 1>, scalar_prefetch = 0 : i64, scratch_operands = 0 : i64, tpu.core_type = #tpu.core_type<tc>, window_params = [{transform_indices = @transform_0, window_bounds = array<i64: 8, 256>}, {transform_indices = @transform_1, window_bounds = array<i64: 8, 2>}, {transform_indices = @transform_2, window_bounds = array<i64: 8, 256>}]} {
    %c0 = arith.constant 0 : index
    %c0_0 = arith.constant 0 : index
    %0 = vector.load %arg1[%c0, %c0_0] : memref<8x256xf32, #tpu.memory_space<vmem>>, vector<8x256xf32>
    %c0_1 = arith.constant 0 : index
    %c0_2 = arith.constant 0 : index
    %1 = vector.load %arg2[%c0_1, %c0_2] : memref<8x2xf32, #tpu.memory_space<vmem>>, vector<8x1xf32>
    %c0_3 = arith.constant 0 : index
    %c1 = arith.constant 1 : index
    %2 = vector.load %arg2[%c0_3, %c1] : memref<8x2xf32, #tpu.memory_space<vmem>>, vector<8x1xf32>
    %3 = vector.broadcast %1 : vector<8x1xf32> to vector<8x256xf32>
    %4 = arith.mulf %0, %3 : vector<8x256xf32>
    %5 = vector.broadcast %2 : vector<8x1xf32> to vector<8x256xf32>
    %6 = arith.addf %4, %5 : vector<8x256xf32>
    %c0_4 = arith.constant 0 : index
    %c0_5 = arith.constant 0 : index
    %7 = vector.load %arg3[%c0_4, %c0_5] : memref<8x256xf32, #tpu.memory_space<vmem>>, vector<8x256xf32>
    tpu.vector_store %arg3[%c0_4, %c0_5], %6 {strides = array<i32>} : memref<8x256xf32, #tpu.memory_space<vmem>>, vector<8x256xf32>,
    return
  }
  func.func @transform_0(%arg0: i32) -> (i32, i32) {
    %c0_i32 = arith.constant 0 : i32
    %c0_i32_0 = arith.constant 0 : i32
    return %arg0, %c0_i32 : i32, i32
  }
  func.func @transform_1(%arg0: i32) -> (i32, i32) {
    %c0_i32 = arith.constant 0 : i32
    %c0_i32_0 = arith.constant 0 : i32
    return %arg0, %c0_i32 : i32, i32
  }
  func.func @transform_2(%arg0: i32) -> (i32, i32) {
    %c0_i32 = arith.constant 0 : i32
    %c0_i32_0 = arith.constant 0 : i32
    return %arg0, %c0_i32 : i32, i32
  }
}

</mosaic_0001>

<bundles_post_ra>
// kernel: tpu_custom_call.1
= control target key start
LH: loop header
LB: loop body
LE: loop exit
PB: predicated region body
PF: predicated region fallthrough
CT: control target
= control target key end

     0   :  { %7 = vsyncpa [#allocation3], 0  ;;  %s157_s0 = inlined_call_operand.hbm [shape: f32[8,256], index: 0, kind: input, shape index: {}]   ;;  %s158_s1 = inlined_call_operand.vmem [shape: f32[8,2], index: 1, kind: input, shape index: {}]   ;;  %s159_s2 = inlined_call_operand.hbm [shape: f32[8,256], index: 2, kind: output, shape index: {}]  }
   0x1   :  { %8 = vsyncpa [#allocation4], 0  ;;  %s111_s9 = smov [#allocation2]   ;;  %s63_s13 = scalar_lea.hbm %s157_s0, 256 }
   0x2   :  { %s15_s10 = sshll.u32 %s111_s9, 4  ;;  %p64_p0 = scmp.ne.s32.totalorder %s157_s0, %s63_s13  ;;  %s16_s10 = int_to_ptr.vmem [resolvable:$true] %s15_s10 }
   0x3   :  { %p67_p1 = scmp.lt.u32.totalorder %s63_s13, %s157_s0 }
   0x5   :  { %p69_p2 = pnand %p67_p1, %p64_p0 }
   0x7   :  { %72 = shalt.err (!%p69_p2)
}
   0x8   :  { %s73_s18 = scalar_lea.vmem %s16_s10, 256  ;;  %p78_p4 = scmp.lt.s32.totalorder %s16_s10, %s16_s10 }
   0x9   :  { %p74_p3 = scmp.ne.s32.totalorder %s16_s10, %s73_s18  ;;  %p79_p5 = scmp.lt.s32.totalorder %s73_s18, %s73_s18 }
   0xb   :  { %p80_p6 = por %p79_p5, %p78_p4 }
   0xd   :  { %p81_p7 = pnand %p80_p6, %p74_p3 }
   0xf   :  { %84 = shalt.err (!%p81_p7)
}
  0x10   :  { %18 = dma.hbm_to_vmem [thread:$0]  %s157_s0, 256, %s16_s10, [#allocation3]  }
  0x11   :  { %107 = dma.done.wait [#allocation3], 256  }
  0x12   :  { %108 = vsyncadd [#allocation3], 4294967040  ;;  %v112_v0 = vmov 0   ;;  %v26_v1 = vld [vmem:[%s158_s1] sm:$0xff]  ;;  %v113_v2 = vmov 1   ;;  %v25_v5 = vld [vmem:[#allocation2 + $0x8] sm:$0xff] }
  0x13   :  { %61 = vset.pattern.permute.xlu0 %v112_v0  ;;  %v24_v4 = vld [vmem:[#allocation2] sm:$0xff]  ;;  %s114_s23 = smov [#allocation5]  }
  0x14   :  { %29 = vperm.xlu0 %61, %v26_v1   ;;  %s48_s24 = sshll.u32 %s114_s23, 4  ;;  %s49_s24 = int_to_ptr.vmem [resolvable:$true] %s48_s24 }
  0x15   :  { %s85_s0 = scalar_lea.vmem %s49_s24, 256  ;;  %p90_p9 = scmp.lt.s32.totalorder %s49_s24, %s49_s24 }
  0x16   :  { %p86_p8 = scmp.ne.s32.totalorder %s49_s24, %s85_s0  ;;  %p91_p10 = scmp.lt.s32.totalorder %s85_s0, %s85_s0 }
  0x18   :  { %62 = vset.pattern.permute.xlu0 %v113_v2  ;;  %p92_p11 = por %p91_p10, %p90_p9 }
  0x19   :  { %35 = vperm.xlu0 %62, %v26_v1  }
  0x1a   :  { %p93_p12 = pnand %p92_p11, %p86_p8 }
  0x93   :  { %v30_v3 = vpop.permute.xlu0 %29 }
  0x94   :  { %v32_v6 = vmul.f32 %v30_v3, %v24_v4  ;;  %v33_v7 = vmul.f32 %v30_v3, %v25_v5 }
  0x98   :  { %v36_v8 = vpop.permute.xlu0 %35 }
  0x99   :  { %v38_v9 = vadd.f32 %v36_v8, %v32_v6  ;;  %v39_v10 = vadd.f32 %v36_v8, %v33_v7 }
  0x9b   :  { %40 = vst [vmem:[#allocation5] sm:$0xff] %v38_v9  ;;  %41 = vst [vmem:[#allocation5 + $0x8] sm:$0xff] %v39_v10 }
  0x9c   :  { %96 = shalt.err (!%p93_p12)
}
  0x9d   :  { %s97_s26 = scalar_lea.hbm %s159_s2, 256 }
  0x9e   :  { %p98_p13 = scmp.ne.s32.totalorder %s159_s2, %s97_s26  ;;  %p101_p0 = scmp.lt.u32.totalorder %s97_s26, %s159_s2 }
  0xa0   :  { %p103_p1 = pnand %p101_p0, %p98_p13 }
  0xa2   :  { %106 = shalt.err (!%p103_p1)
}
  0xa3   :  { %51 = dma.vmem_to_hbm [thread:$0]  %s49_s24, 256, %s159_s2, [#allocation4]  }
  0xa4   :  { %109 = dma.done.wait [#allocation4], 256  }
  0xa5   :  { %110 = vsyncadd [#allocation4], 4294967040 }
  0xa6   :  { %55 = vsyncpa [#allocation3], 1 }
  0xa7   :  { %56 = vsyncpa [#allocation4], 1 }

</bundles_post_ra>
